<compile_context>
chip_gen: v5e
topology: v5e:2x2
jax: 0.10.0
libtpu: 0.0.40
codegen_flags: <defaults>
</compile_context>

<pallas_src>
import jax
import jax.numpy as jnp
from jax.experimental import pallas as pl
from jax.experimental.pallas import tpu as pltpu

_LANE = 128
_SUBLANE = 8
# ~2 MiB per block: 2 refs x 2 pipeline buffers ~= 8 MiB live VMEM -> safe on
# every generation without raising vmem_limit_bytes.  (Measured f32-add tiling
# on v6e: ~85% of HBM roofline at 1 MiB tiles, ~86% at 4 MiB -- 2 MiB sits on
# the flat part of the curve.)
_TARGET_BLOCK_BYTES = 2 * 1024 * 1024
_MAX_LANE_COLS = 128 * _LANE          # cap lane width at 16384 elements
_MIN_PALLAS_ELEMS = _SUBLANE * _LANE  # below one vreg, skip the kernel entirely


def _identity_kernel(x_ref, o_ref):
    # Straight VMEM tile copy (nn.Identity forward).
    o_ref[...] = x_ref[...]


def _lane_dense_cols(n):
    """Largest multiple-of-128 divisor of n, capped at _MAX_LANE_COLS (0 if none)."""
    if n % _LANE != 0:
        return 0
    m = n // _LANE
    d_max = min(m, _MAX_LANE_COLS // _LANE)
    for d in range(d_max, 0, -1):
        if m % d == 0:
            return d * _LANE
    return _LANE


def _flatten_for_copy(x):
    """Choose a lane-dense 2-D view of x for the copy kernel."""
    n = x.size
    cols = _lane_dense_cols(n)
    if cols:
        return x.reshape(n // cols, cols)
    # Fallback: element count not a multiple of 128 -> keep original trailing dim.
    # TODO(synk): non-128-divisible inputs keep masked partial stores on the ragged edge.
    last = x.shape[-1] if x.ndim >= 1 else 1
    return x.reshape(-1, last)


def _pick_block(rows, cols, itemsize):
    """Byte-budgeted block shape obeying the (8, 128) / full-extent rules."""
    total = rows * cols * itemsize
    if total <= _TARGET_BLOCK_BYTES:
        return rows, cols                                   # single full-extent block
    if _SUBLANE * cols * itemsize <= _TARGET_BLOCK_BYTES:
        tile_c = cols                                       # full lane extent
    else:
        tile_c = (_TARGET_BLOCK_BYTES // (_SUBLANE * itemsize) // _LANE) * _LANE
        tile_c = max(_LANE, min(tile_c, cols))              # multiple of 128 lanes
    tile_r = _TARGET_BLOCK_BYTES // (tile_c * itemsize)
    if tile_r >= rows:
        tile_r = rows                                       # full sublane extent
    else:
        tile_r = max(_SUBLANE, (tile_r // _SUBLANE) * _SUBLANE)  # multiple of 8
    return tile_r, tile_c


def identity_layer(x, mask=None):
    """Pallas equivalent of IdentityLayer.forward(x, mask) -> x (mask ignored)."""
    x = jnp.asarray(x)

    # Degenerate / tiny inputs: fixed launch + grid overhead dwarfs the copy,
    # and identity requires no data movement -- hand the array straight back.
    if x.ndim == 0 or x.size == 0 or x.size < _MIN_PALLAS_ELEMS:
        return x

    orig_shape = x.shape
    x2 = _flatten_for_copy(x)
    rows, cols = x2.shape
    itemsize = jnp.dtype(x2.dtype).itemsize

    tile_r, tile_c = _pick_block(rows, cols, itemsize)
    grid = (pl.cdiv(rows, tile_r), pl.cdiv(cols, tile_c))

    out2 = pl.pallas_call(
        _identity_kernel,
        out_shape=jax.ShapeDtypeStruct((rows, cols), x2.dtype),
        grid_spec=pltpu.PrefetchScalarGridSpec(
            num_scalar_prefetch=0,
            grid=grid,
            in_specs=[pl.BlockSpec((tile_r, tile_c), lambda i, j: (i, j))],
            out_specs=pl.BlockSpec((tile_r, tile_c), lambda i, j: (i, j)),
        ),
        compiler_params=pltpu.CompilerParams(
            # Both axes are independent -> shardable across v7x's 2 TensorCores;
            # near-neutral on single-TC v5e/v6e, so it costs nothing there.
            dimension_semantics=("parallel", "parallel"),
        ),
        # Advisory hint for XLA's scheduler: pure HBM read + write, zero FLOPs.
        cost_estimate=pl.CostEstimate(
            flops=0,
            transcendentals=0,
            bytes_accessed=2 * x2.size * itemsize,
        ),
    )(x2)

    return out2.reshape(orig_shape)


if __name__ == "__main__":
    key = jax.random.PRNGKey(0)

    # Primary check: shape consistent with a typical DEE input (batch, C, H, W).
    x = jax.random.normal(key, (2, 4, 16, 16), dtype=jnp.float32)
    y = jax.block_until_ready(identity_layer(x))
    assert y.shape == x.shape and y.dtype == x.dtype
    assert bool(jnp.array_equal(y, x))

    # `mask` argument is accepted and ignored, matching the nn.Module signature.
    y_masked = jax.block_until_ready(identity_layer(x, mask=jnp.ones((2, 4))))
    assert bool(jnp.array_equal(y_masked, x))

    # Multi-block path (grid > 1 along the row axis, lane-dense 16384-wide rows).
    x_big = jax.random.normal(jax.random.PRNGKey(1), (1024, 1024), dtype=jnp.float32)
    y_big = jax.block_until_ready(identity_layer(x_big))
    assert bool(jnp.array_equal(y_big, x_big))

    # bf16 path (sub-32-bit dtype, lane-dense flatten).
    x_bf = jax.random.normal(jax.random.PRNGKey(3), (8, 256), dtype=jnp.bfloat16)
    y_bf = jax.block_until_ready(identity_layer(x_bf))
    assert y_bf.dtype == jnp.bfloat16 and bool(jnp.array_equal(y_bf, x_bf))

    # Tiny-input bypass path (no kernel launch; identity needs no data movement).
    x_tiny = jax.random.normal(jax.random.PRNGKey(2), (3, 5), dtype=jnp.bfloat16)
    y_tiny = jax.block_until_ready(identity_layer(x_tiny))
    assert bool(jnp.array_equal(y_tiny, x_tiny))

    print("KERNEL_OK")
</pallas_src>

<mosaic_0001>
module attributes {stable_mosaic.version = 11 : i64} {
  func.func @_identity_kernel(%arg0: i32, %arg1: i32, %arg2: memref<1x2048xf32, #tpu.memory_space<vmem>>, %arg3: memref<1x2048xf32, #tpu.memory_space<vmem>>) attributes {dimension_semantics = [#tpu.dimension_semantics<parallel>, #tpu.dimension_semantics<parallel>], iteration_bounds = array<i64: 1, 1>, scalar_prefetch = 0 : i64, scratch_operands = 0 : i64, tpu.core_type = #tpu.core_type<tc>, window_params = [{transform_indices = @transform_0, window_bounds = array<i64: 1, 2048>}, {transform_indices = @transform_1, window_bounds = array<i64: 1, 2048>}]} {
    %c0 = arith.constant 0 : index
    %c0_0 = arith.constant 0 : index
    %0 = vector.load %arg2[%c0, %c0_0] : memref<1x2048xf32, #tpu.memory_space<vmem>>, vector<1x2048xf32>
    %c0_1 = arith.constant 0 : index
    %c0_2 = arith.constant 0 : index
    %1 = vector.load %arg3[%c0_1, %c0_2] : memref<1x2048xf32, #tpu.memory_space<vmem>>, vector<1x2048xf32>
    tpu.vector_store %arg3[%c0_1, %c0_2], %0 {strides = array<i32>} : memref<1x2048xf32, #tpu.memory_space<vmem>>, vector<1x2048xf32>,
    return
  }
  func.func @transform_0(%arg0: i32, %arg1: i32) -> (i32, i32) {
    %c0_i32 = arith.constant 0 : i32
    return %arg0, %arg1 : i32, i32
  }
  func.func @transform_1(%arg0: i32, %arg1: i32) -> (i32, i32) {
    %c0_i32 = arith.constant 0 : i32
    return %arg0, %arg1 : i32, i32
  }
}

</mosaic_0001>

<bundles_post_ra>
// kernel: tpu_custom_call.1
= control target key start
LH: loop header
LB: loop body
LE: loop exit
PB: predicated region body
PF: predicated region fallthrough
CT: control target
= control target key end

     0   :  { %6 = vsyncpa [#allocation3], 0  ;;  %s116_s0 = inlined_call_operand.hbm [shape: f32[1,2048], index: 0, kind: input, shape index: {}]   ;;  %s117_s1 = inlined_call_operand.hbm [shape: f32[1,2048], index: 1, kind: output, shape index: {}]  }
   0x1   :  { %7 = vsyncpa [#allocation4], 0  ;;  %s13_s8 = sshll.u32 %s116_s0, 4  ;;  %s98_s9 = smov [#allocation2]   ;;  %s14_s8 = int_to_ptr.hbm [resolvable:$true] %s13_s8 }
   0x2   :  { %s15_s10 = sshll.u32 %s98_s9, 4  ;;  %s16_s10 = int_to_ptr.vmem [resolvable:$true] %s15_s10 }
   0x3   :  { %18 = dma.hbm_to_vmem [thread:$0]  %s14_s8, 256, %s16_s10, [#allocation3]  }
   0x4   :  { %94 = dma.done.wait [#allocation3], 256  }
   0x5   :  { %95 = vsyncadd [#allocation3], 4294967040  ;;  %s99_s11 = smov [#allocation5]   ;;  %s34_s15 = sshll.u32 %s117_s1, 4  ;;  %v23_v0 = vld [vmem:[#allocation2] sm:$0xff]  ;;  %v24_v1 = vld [vmem:[#allocation2 + $0x8] sm:$0xff]  ;;  %s35_s15 = int_to_ptr.hbm [resolvable:$true] %s34_s15 }
   0x6   :  { %s32_s12 = sshll.u32 %s99_s11, 4  ;;  %25 = vst [vmem:[#allocation5] sm:$0xff] %v23_v0  ;;  %s33_s12 = int_to_ptr.vmem [resolvable:$true] %s32_s12 }
   0x7   :  { %26 = vst [vmem:[#allocation5 + $0x8] sm:$0xff] %v24_v1 }
   0x8   :  { %37 = dma.vmem_to_hbm [thread:$0]  %s33_s12, 256, %s35_s15, [#allocation4]  }
   0x9   :  { %96 = dma.done.wait [#allocation4], 256  }
   0xa   :  { %97 = vsyncadd [#allocation4], 4294967040 }
   0xb   :  { %42 = vsyncpa [#allocation3], 1 }
   0xc   :  { %43 = vsyncpa [#allocation4], 1 }

</bundles_post_ra>
